<compile_context>
chip_gen: v5e
topology: v5e:2x2
jax: 0.10.0
libtpu: 0.0.40
codegen_flags: <defaults>
</compile_context>

<pallas_src>
import jax
import jax.numpy as jnp
from jax.experimental import pallas as pl
from jax.experimental.pallas import tpu as pltpu


def _encoder_kernel(x_ref, w_ref, o_ref):
    # x_ref: (1, L, tk)  transposed frames (im2col^T) for one batch / frame tile
    # w_ref: (N, L)      conv1d_U weight (resident, tiny)
    # o_ref: (1, N, tk)  output tile in torch NCW layout (frames on lane axis)
    acc = jnp.dot(w_ref[...], x_ref[0],
                  preferred_element_type=jnp.float32)       # (N, tk) on the MXU
    o_ref[0] = jnp.maximum(acc, 0.0).astype(o_ref.dtype)    # fused ReLU


def encoder_forward(mixture, weight, L, compute_dtype=jnp.bfloat16, block_k=1024):
    """mixture: [B, T] f32; weight: [N, L] f32 (conv1d_U weight squeezed).

    Returns relu(conv1d(mixture[:, None, :], W, stride=L//2)) as [B, N, K] f32.
    """
    if L % 2 != 0:
        # TODO(synk): odd L (stride=(L-1)//2) would need a third partial-chunk
        # term; DPRNN uses even window lengths, so only even L is implemented.
        raise NotImplementedError("encoder_forward requires even L (stride = L//2)")
    hop = L // 2
    B, T = mixture.shape
    N = weight.shape[0]
    if T < L:
        raise ValueError("signal shorter than one window")
    K = (T - L) // hop + 1             # number of frames (== torch conv1d output)
    nck = K + 1                        # half-window chunks; (K+1)*hop <= T always

    # Frame tiling along the lane axis: full-K single block when it fits,
    # otherwise lane-aligned tiles of `block_k` frames.
    if K <= block_k:
        tk, nkb = K, 1
    else:
        tk = max(128, (block_k // 128) * 128)
        nkb = pl.cdiv(K, tk)
    ncols = nkb * tk                   # padded frame count (== K when nkb == 1)

    # --- wrapper glue (input-sized only, no gather, no output-sized copies) --
    chunks = mixture[:, : nck * hop].reshape(B, nck, hop)               # [B, K+1, hop]
    chunks_t = jnp.transpose(chunks, (0, 2, 1)).astype(compute_dtype)   # [B, hop, K+1]
    if ncols + 1 > nck:
        chunks_t = jnp.pad(chunks_t, ((0, 0), (0, 0), (0, ncols + 1 - nck)))
    # frames_t[b, :, k] == mixture[b, k*hop : k*hop + L]  (2x overlap only)
    frames_t = jnp.concatenate([chunks_t[:, :, :ncols],
                                chunks_t[:, :, 1:ncols + 1]], axis=1)    # [B, L, ncols]
    w = weight.astype(compute_dtype)                                     # [N, L]

    cost = pl.CostEstimate(
        flops=2 * B * N * K * L,
        transcendentals=0,
        bytes_accessed=(frames_t.size * frames_t.dtype.itemsize
                        + w.size * w.dtype.itemsize
                        + B * N * K * 4))

    # TODO(synk): for very large encoder dims N (output tile N*tk*4B approaching
    # the VMEM budget) add an N-tiled grid axis as well; DPRNN uses N <= 512.
    out = pl.pallas_call(
        _encoder_kernel,
        out_shape=jax.ShapeDtypeStruct((B, N, K), jnp.float32),
        grid_spec=pltpu.PrefetchScalarGridSpec(
            num_scalar_prefetch=0,
            grid=(B, nkb),
            in_specs=[
                pl.BlockSpec((1, L, tk), lambda b, j: (b, 0, j)),
                pl.BlockSpec((N, L), lambda b, j: (0, 0)),
            ],
            out_specs=pl.BlockSpec((1, N, tk), lambda b, j: (b, 0, j)),
        ),
        compiler_params=pltpu.CompilerParams(
            dimension_semantics=("parallel", "parallel"),
            vmem_limit_bytes=32 * 1024 * 1024,
        ),
        cost_estimate=cost,
    )(frames_t, w)
    return out


def _reference_forward(mixture, weight, L):
    """Pure-JAX reference mimicking torch F.relu(conv1d(mixture[:,None,:], W))."""
    hop = L // 2
    B, T = mixture.shape
    K = (T - L) // hop + 1
    idx = jnp.arange(K)[:, None] * hop + jnp.arange(L)[None, :]
    frames = mixture[:, idx]                                  # [B, K, L]
    out = jnp.einsum("bkl,nl->bnk", frames, weight)           # [B, N, K]
    return jnp.maximum(out, 0.0)


if __name__ == "__main__":
    # Shapes consistent with the module: L=8 window, N=32 encoder dim.
    L, N = 8, 32
    key = jax.random.PRNGKey(0)
    k_x, k_w = jax.random.split(key)
    # Deterministic synthetic init for conv1d_U weight (torch shape [N, 1, L]):
    weight = jax.random.normal(k_w, (N, L), dtype=jnp.float32) * (1.0 / jnp.sqrt(L))

    enc = jax.jit(encoder_forward, static_argnames=("L", "compute_dtype", "block_k"))

    # --- test 1: small signal, single-block fast path ------------------------
    B, T = 2, 68                                   # hop=4 -> K = 16
    mixture = jax.random.normal(k_x, (B, T), dtype=jnp.float32)
    K = (T - L) // (L // 2) + 1
    ref = _reference_forward(mixture, weight, L)

    out_f32 = jax.block_until_ready(enc(mixture, weight, L=L,
                                        compute_dtype=jnp.float32))
    assert out_f32.shape == (B, N, K) and out_f32.dtype == jnp.float32
    assert jnp.allclose(out_f32, ref, atol=1e-5, rtol=1e-5), "f32 kernel mismatch"

    out_bf16 = jax.block_until_ready(enc(mixture, weight, L=L))
    assert out_bf16.shape == (B, N, K)
    ref_bf = _reference_forward(mixture.astype(jnp.bfloat16).astype(jnp.float32),
                                weight.astype(jnp.bfloat16).astype(jnp.float32), L)
    assert jnp.allclose(out_bf16, ref_bf, atol=1e-4, rtol=1e-4), "bf16 kernel mismatch"
    assert jnp.allclose(out_bf16, ref, atol=1e-1, rtol=1e-1), "bf16 path drifted from f32 ref"

    # --- test 2: longer signal, exercises the K-tiled / padded writeback path
    B2, T2 = 2, 644                                # hop=4 -> K = 160
    mixture2 = jax.random.normal(k_x, (B2, T2), dtype=jnp.float32)
    K2 = (T2 - L) // (L // 2) + 1
    ref2 = _reference_forward(mixture2, weight, L)
    out2 = jax.block_until_ready(enc(mixture2, weight, L=L,
                                     compute_dtype=jnp.float32, block_k=128))
    assert out2.shape == (B2, N, K2)
    assert jnp.allclose(out2, ref2, atol=1e-5, rtol=1e-5), "tiled-K kernel mismatch"

    print("KERNEL_OK")
</pallas_src>

<mosaic_0001>
module attributes {stable_mosaic.version = 11 : i64} {
  func.func @_encoder_kernel(%arg0: i32, %arg1: i32, %arg2: memref<1x8x16xf32, #tpu.memory_space<vmem>>, %arg3: memref<32x8xf32, #tpu.memory_space<vmem>>, %arg4: memref<1x32x16xf32, #tpu.memory_space<vmem>>) attributes {dimension_semantics = [#tpu.dimension_semantics<parallel>, #tpu.dimension_semantics<parallel>], iteration_bounds = array<i64: 2, 1>, scalar_prefetch = 0 : i64, scratch_operands = 0 : i64, tpu.core_type = #tpu.core_type<tc>, window_params = [{transform_indices = @transform_0, window_bounds = array<i64: 1, 8, 16>}, {pipeline_mode = #tpu.pipeline_mode<synchronous>, transform_indices = @transform_1, window_bounds = array<i64: 32, 8>}, {transform_indices = @transform_2, window_bounds = array<i64: 1, 32, 16>}]} {
    %c0 = arith.constant 0 : index
    %c0_0 = arith.constant 0 : index
    %0 = vector.load %arg3[%c0, %c0_0] : memref<32x8xf32, #tpu.memory_space<vmem>>, vector<32x8xf32>
    %c0_1 = arith.constant 0 : index
    %c0_2 = arith.constant 0 : index
    %c0_3 = arith.constant 0 : index
    %1 = vector.load %arg2[%c0_1, %c0_2, %c0_3] : memref<1x8x16xf32, #tpu.memory_space<vmem>>, vector<1x8x16xf32>
    %2 = vector.shape_cast %1 : vector<1x8x16xf32> to vector<8x16xf32>
    %cst = arith.constant dense<0.000000e+00> : vector<32x16xf32>
    %3 = tpu.matmul %0, %2, %cst {dimension_numbers = #tpu.dot_dimension_numbers<[1], [0], [0], [1], [0, 0, 1, 1], [], []>} : vector<32x8xf32>, vector<8x16xf32>, vector<32x16xf32> -> vector<32x16xf32>
    %cst_4 = arith.constant 0.000000e+00 : f32
    %4 = vector.broadcast %cst_4 : f32 to vector<32x16xf32>
    %5 = arith.maximumf %3, %4 : vector<32x16xf32>
    %c0_5 = arith.constant 0 : index
    %c0_6 = arith.constant 0 : index
    %c0_7 = arith.constant 0 : index
    %6 = vector.load %arg4[%c0_5, %c0_6, %c0_7] : memref<1x32x16xf32, #tpu.memory_space<vmem>>, vector<1x32x16xf32>
    %7 = vector.shape_cast %6 : vector<1x32x16xf32> to vector<32x16xf32>
    %8 = vector.shape_cast %5 : vector<32x16xf32> to vector<1x32x16xf32>
    tpu.vector_store %arg4[%c0_5, %c0_6, %c0_7], %8 {strides = array<i32>} : memref<1x32x16xf32, #tpu.memory_space<vmem>>, vector<1x32x16xf32>,
    return
  }
  func.func @transform_0(%arg0: i32, %arg1: i32) -> (i32, i32, i32) {
    %c0_i32 = arith.constant 0 : i32
    %c0_i32_0 = arith.constant 0 : i32
    return %arg0, %c0_i32, %arg1 : i32, i32, i32
  }
  func.func @transform_1(%arg0: i32, %arg1: i32) -> (i32, i32) {
    %c0_i32 = arith.constant 0 : i32
    %c0_i32_0 = arith.constant 0 : i32
    %c0_i32_1 = arith.constant 0 : i32
    return %c0_i32, %c0_i32_0 : i32, i32
  }
  func.func @transform_2(%arg0: i32, %arg1: i32) -> (i32, i32, i32) {
    %c0_i32 = arith.constant 0 : i32
    %c0_i32_0 = arith.constant 0 : i32
    return %arg0, %c0_i32, %arg1 : i32, i32, i32
  }
}

</mosaic_0001>

<bundles_post_ra>
// kernel: encoder_forward.1
= control target key start
LH: loop header
LB: loop body
LE: loop exit
PB: predicated region body
PF: predicated region fallthrough
CT: control target
= control target key end

     0   :  { %s389_s9 = smov 0   ;;  %s391_s10 = smov 0   ;;  %s434_s0 = inlined_call_operand.vmem [shape: f32[2,8,16], index: 0, kind: input, shape index: {}]   ;;  %s435_s1 = inlined_call_operand.vmem [shape: f32[32,8], index: 1, kind: input, shape index: {}]   ;;  %s436_s2 = inlined_call_operand.vmem [shape: f32[2,32,16], index: 2, kind: output, shape index: {}]  }
   0x1   :  { %s393_s11 = smov 0  }
   0x2 LB: > { %s24_s12 = sadd.s32 1, %s368_s10  ;;  %p312_p0 = scmp.ge.s32.totalorder %s372_s11, 1  ;;  %s372_s11 = sphi %s393_s11, %s12_s11   ;;  %s368_s10 = sphi %s391_s10, %s438_s10   ;;  %s364_s9 = sphi %s389_s9, %s437_s9  }
   0x3   : > { %p26_p1 = scmp.ge.s32.totalorder %s24_s12, 2  ;;  %p130_p2 = scmp.lt.s32.totalorder %s372_s11, 3 }
   0x5   : > { %s440_s12 = smov (%p26_p1, %s24_s12), 0  ;;  %p131_p3 = pnand %p312_p0, %p130_p2 }
   0x6   : > { %p157_p4 = scmp.lt.s32.totalorder (!%p131_p3), %s364_s9, 1 }
   0x7   : > { %134 = sbr.rel (%p131_p3) target bundleno = 153 (0x99), region = 28 }
   0xc   : > { %s442_s9 = smov (!%p157_p4, %s364_s9), 1  ;;  %v174_v0 = vld [vmem:[%s435_s1 + $0x10] sm:$0xff]  ;;  %vm177_vm0 = vcmask 64512   ;;  %v175_v1 = vld [vmem:[%s435_s1 + $0x18] sm:$0xff]  ;;  %v172_v3 = vld [vmem:[%s435_s1] sm:$0xff]  ;;  %vm223_vm1 = vcmask 130048  }
   0xd   : > { %s313_s13 = sshll.u32 %s442_s9, 3  ;;  %v173_v4 = vld [vmem:[%s435_s1 + $0x8] sm:$0xff]  ;;  %s322_s25 = sshll.u32 %s442_s9, 5 }
   0xe   : > { %s163_s16 = scalar_lea.vmem %s434_s0, %s313_s13  ;;  %s171_s28 = scalar_lea.vmem %s436_s2, %s322_s25 }
   0xf   : > { %v176_v2 = vld [vmem:[%s163_s16] sm:$0xff] }
  0x10   : > { %324 = vmatpush.msra.mxu2 %v176_v2  ;;  %325 = vmatpush.msra.mxu3 %v176_v2 }
  0x11   : > { %318 = vmatmul.msk.f32.vlgmr.msra.gmra.mxu2 %vm177_vm0, %v174_v0  ;;  %319 = vmatmul.msk.f32.vlgmr.msra.gmra.mxu3 %vm177_vm0, %v175_v1 }
  0x12   : > { %205 = vmatpush.msra.mxu0 %v176_v2  ;;  %323 = vmatpush.msra.mxu1 %v176_v2 }
  0x13   : > { %316 = vmatmul.msk.f32.vlgmr.msra.gmra.mxu0 %vm177_vm0, %v172_v3  ;;  %317 = vmatmul.msk.f32.vlgmr.msra.gmra.mxu1 %vm177_vm0, %v173_v4 }
  0x90   : > { %v207_v5 = vpop.f32.mrf.mxu0  ;;  %v210_v6 = vpop.f32.mrf.mxu1 }
  0x91   : > { %v219_v7 = vmax.f32 %v207_v5, 0.0  ;;  %v220_v8 = vmax.f32 %v210_v6, 0.0 }
  0x93   : > { %224 = vst.msk [vmem:[%s171_s28] sm:$0xff] %vm223_vm1, %v219_v7 }
  0x94   : > { %225 = vst.msk [vmem:[%s171_s28 + $0x8] sm:$0xff] %vm223_vm1, %v220_v8  ;;  %v213_v9 = vpop.f32.mrf.mxu2  ;;  %v216_v10 = vpop.f32.mrf.mxu3 }
  0x95   : > { %v221_v11 = vmax.f32 %v213_v9, 0.0  ;;  %v222_v12 = vmax.f32 %v216_v10, 0.0 }
  0x97   : > { %226 = vst.msk [vmem:[%s171_s28 + $0x10] sm:$0xff] %vm223_vm1, %v221_v11 }
  0x98   : > { %227 = vst.msk [vmem:[%s171_s28 + $0x18] sm:$0xff] %vm223_vm1, %v222_v12 }
  0x99 PF: > { %s12_s11 = sadd.s32 1, %s372_s11   ;;  %s437_s9 = smov %s368_s10 }
  0x9a   : > { %p9_p5 = scmp.ge.s32.totalorder %s12_s11, 4   ;;  %s438_s10 = smov %s440_s12 }
  0x9c   :  { %11 = sbr.rel (!%p9_p5) target bundleno = 2 (0x2), region = 58 }

</bundles_post_ra>
